<compile_context>
chip_gen: v7x
topology: tpu7x:2x2x1
jax: 0.10.0
libtpu: 0.0.40
codegen_flags: <defaults>
</compile_context>

<pallas_src>
import functools

import jax
import jax.numpy as jnp
from jax import lax
from jax.experimental import pallas as pl
from jax.experimental.pallas import tpu as pltpu


# --------------------------------------------------------------------------------------
# Kernel 1: KL(prior || posterior) with prior = N(0, 1), posterior = N(mu, sigma^2)
#   per element: log_sigma + 0.5 * (1 + mu^2) * exp(-2 * log_sigma) - 0.5
# The packed table is (V, 2*D) = [mu | log_sigma]; a single streamed input.
# --------------------------------------------------------------------------------------
def _kl_kernel(packed_ref, kl_ref, *, tile_v, n_i, num_rows, dim):
    c = pl.program_id(0)   # "parallel" vocab half (v7x megacore); sequential on 1-TC chips
    i = pl.program_id(1)   # "arbitrary" accumulation axis over vocab blocks

    @pl.when(i == 0)
    def _():
        kl_ref[...] = jnp.zeros_like(kl_ref)

    blk = packed_ref[...].astype(jnp.float32)          # (tile_v, 2*dim)
    mu = blk[:, :dim]
    ls = blk[:, dim:]
    inv_var = jnp.exp(-2.0 * ls)                       # EUP exp; avoids an f32 divide on the VALU
    kl_elem = ls + 0.5 * (1.0 + mu * mu) * inv_var - 0.5

    # Mask rows past the end of the vocab: the last block of each half is partial, and the
    # clamped duplicate block (odd block counts) is fully out of range.  Use a select, never a
    # multiply (the out-of-bounds part of the block is undefined and may hold inf/nan).
    start = (c * n_i + i) * tile_v
    rows = start + lax.broadcasted_iota(jnp.int32, kl_elem.shape, 0)
    kl_elem = jnp.where(rows < num_rows, kl_elem, 0.0)

    # Per-lane partial accumulation (sublane reduce runs on the otherwise-idle XLU); the tiny
    # (2, 1, dim) partial output is summed in the wrapper.
    kl_ref[...] = kl_ref[...] + jnp.sum(kl_elem, axis=0, keepdims=True)[None]


def kl_divergence(packed, dim, *, target_block_bytes=2 * 1024 * 1024):
    """Sum of elementwise KL(N(0,1) || N(mu, sigma^2)) over the packed (V, 2D) table."""
    V, two_d = packed.shape
    row_bytes = two_d * packed.dtype.itemsize
    # ~2 MiB blocks hit >=85% of HBM roofline on v5e/v6e and are near the v7x sweet spot while
    # keeping the double-buffered footprint (~2 x block + tiny output) under every scoped limit.
    tile_v = max(8, min(target_block_bytes // row_bytes, 8192))
    tile_v = (tile_v // 8) * 8
    tile_v = min(tile_v, ((V + 7) // 8) * 8)
    tile_v = max(tile_v, 8)

    n_blocks = pl.cdiv(V, tile_v)
    n_i = pl.cdiv(n_blocks, 2)          # blocks per vocab half (leading "parallel" axis)
    block_bytes = tile_v * two_d * packed.dtype.itemsize
    vmem_limit = int(min(56 * 1024 * 1024, max(16 * 1024 * 1024, 5 * block_bytes)))

    partial = pl.pallas_call(
        functools.partial(_kl_kernel, tile_v=tile_v, n_i=n_i, num_rows=V, dim=dim),
        out_shape=jax.ShapeDtypeStruct((2, 1, dim), jnp.float32),
        grid_spec=pltpu.PrefetchScalarGridSpec(
            num_scalar_prefetch=0,
            grid=(2, n_i),
            in_specs=[
                # Clamp so the duplicated trailing block (odd n_blocks) never indexes past the
                # table; its contribution is masked to zero in-kernel.
                pl.BlockSpec((tile_v, two_d),
                             lambda c, i: (jnp.minimum(c * n_i + i, n_blocks - 1), 0)),
            ],
            out_specs=pl.BlockSpec((1, 1, dim), lambda c, i: (c, 0, 0)),
        ),
        compiler_params=pltpu.CompilerParams(
            dimension_semantics=("parallel", "arbitrary"),
            vmem_limit_bytes=vmem_limit,
        ),
    )(packed)
    return jnp.sum(partial)


# --------------------------------------------------------------------------------------
# Kernel 2: fused rsample + embedding lookup.
#   Scalar-prefetched ids in SMEM drive per-row DMAs of the packed [mu | log_sigma] row and the
#   eps row out of HBM (memory_space=pl.ANY); w = mu + exp(log_sigma) * eps is computed on the
#   fly.  Row fetches are double-buffered across grid steps and completion uses one aggregate
#   wait per (slot, stream) semaphore.  No resident V x D table ever exists in VMEM.
# --------------------------------------------------------------------------------------
def _fused_gather_kernel(
    ids_ref,               # SMEM (Np,) int32   (scalar prefetch)
    packed_hbm, eps_hbm,   # HBM refs: (V, 2D) params, (V, D) noise   (pl.ANY)
    out_ref,               # VMEM (T, D) output block
    pk_buf, eps_buf,       # VMEM (2, T, 2D) / (2, T, D) double buffers
    sems,                  # DMA semaphores: (2 slots, 2 streams)
    *, tokens_per_tile, dim,
):
    T = tokens_per_tile
    i = pl.program_id(0)
    n_tiles = pl.num_programs(0)
    slot = i % 2
    next_slot = 1 - slot

    def issue_tile(tile_idx, dst_slot):
        base = tile_idx * T

        def body(t, carry):
            row = ids_ref[base + t]
            pltpu.make_async_copy(packed_hbm.at[pl.ds(row, 1), :],
                                  pk_buf.at[dst_slot, pl.ds(t, 1), :],
                                  sems.at[dst_slot, 0]).start()
            pltpu.make_async_copy(eps_hbm.at[pl.ds(row, 1), :],
                                  eps_buf.at[dst_slot, pl.ds(t, 1), :],
                                  sems.at[dst_slot, 1]).start()
            return carry

        lax.fori_loop(0, T, body, 0, unroll=min(T, 8))

    # Prime the pipeline on the first grid step (the grid axis is sequential/"arbitrary", so
    # every later step's tile was already issued by its predecessor).
    @pl.when(i == 0)
    def _():
        issue_tile(0, 0)

    # Prefetch the NEXT tile's rows into the other slot before waiting on this slot.
    @pl.when(i + 1 < n_tiles)
    def _():
        issue_tile(i + 1, next_slot)

    # Aggregate completion waits: all T row copies of a stream signal the same per-(slot, stream)
    # semaphore; one wait descriptor spanning the whole slot buffer accounts for exactly the same
    # number of bytes as the T started copies.
    pltpu.make_async_copy(pk_buf.at[slot], pk_buf.at[slot], sems.at[slot, 0]).wait()
    pltpu.make_async_copy(eps_buf.at[slot], eps_buf.at[slot], sems.at[slot, 1]).wait()

    pk = pk_buf[slot].astype(jnp.float32)              # (T, 2*dim) = [mu | log_sigma]
    mu = pk[:, :dim]
    sigma = jnp.exp(pk[:, dim:])                       # EUP
    eps = eps_buf[slot].astype(jnp.float32)
    out_ref[...] = (mu + sigma * eps).astype(out_ref.dtype)


def sample_and_gather(ids_flat, packed, eps, dim, *, tokens_per_tile=256):
    N = ids_flat.shape[0]
    V, two_d = packed.shape

    T = max(8, (min(int(tokens_per_tile), 1024) // 8) * 8)
    T = min(T, ((N + 7) // 8) * 8)                 # do not over-tile tiny requests
    Np = ((N + T - 1) // T) * T
    if Np != N:
        ids_flat = jnp.pad(ids_flat, (0, Np - N))  # padded tokens gather row 0, discarded
    # Bounds safety: DMA sources are never out of range.
    ids_flat = jnp.clip(ids_flat.astype(jnp.int32), 0, V - 1)

    out = pl.pallas_call(
        functools.partial(_fused_gather_kernel, tokens_per_tile=T, dim=dim),
        out_shape=jax.ShapeDtypeStruct((Np, dim), packed.dtype),
        grid_spec=pltpu.PrefetchScalarGridSpec(
            num_scalar_prefetch=1,                  # ids land in SMEM
            grid=(Np // T,),
            in_specs=[
                pl.BlockSpec(memory_space=pl.ANY),  # packed params stay in HBM
                pl.BlockSpec(memory_space=pl.ANY),  # eps stays in HBM
            ],
            out_specs=pl.BlockSpec((T, dim), lambda i, ids: (i, 0)),
            scratch_shapes=[
                pltpu.VMEM((2, T, two_d), packed.dtype),
                pltpu.VMEM((2, T, dim), eps.dtype),
                pltpu.SemaphoreType.DMA((2, 2)),
            ],
        ),
        # The cross-step prefetch chain requires sequential grid execution, so the token axis is
        # "arbitrary" (each step primes the next step's slot).
        compiler_params=pltpu.CompilerParams(dimension_semantics=("arbitrary",)),
    )(ids_flat, packed, eps)
    return out[:N]


# --------------------------------------------------------------------------------------
# Module-level wrapper mirroring the PyTorch Embedding forward
# --------------------------------------------------------------------------------------
class PallasBayesEmbedding:
    """Bayesian embedding layer: mean-field Normal posterior over the weight table."""

    def __init__(self, num_embeddings, embedding_dim, padding_idx=None, key=None):
        self.num_embeddings = num_embeddings
        self.embedding_dim = embedding_dim
        if padding_idx is not None and padding_idx < 0:
            padding_idx = num_embeddings + padding_idx
        self.padding_idx = padding_idx  # only affects gradients in torch; fwd is a plain gather
        # TODO(synk): max_norm in-place row renormalization is not implemented (None here).

        key = jax.random.PRNGKey(0) if key is None else key
        k_mu, _ = jax.random.split(key)
        mu = 0.1 * jax.random.normal(k_mu, (num_embeddings, embedding_dim), jnp.float32)
        log_sigma = jnp.full((num_embeddings, embedding_dim), -3.0, jnp.float32)
        # Packed posterior parameters (mu | log_sigma): one row DMA per token fetches both, and
        # the KL kernel streams a single table.
        self.packed = jnp.concatenate([mu, log_sigma], axis=-1)   # (V, 2*D)

    @property
    def mu(self):
        return self.packed[:, : self.embedding_dim]

    @property
    def log_sigma(self):
        return self.packed[:, self.embedding_dim:]

    def forward(self, input_ids, eps, *, tokens_per_tile=256,
                kl_block_bytes=2 * 1024 * 1024):
        # 3) KL(prior || posterior): streams the packed (V, 2D) table once.
        elbo = kl_divergence(self.packed, self.embedding_dim,
                             target_block_bytes=kl_block_bytes)
        # 1) + 2) fused: gather only the requested rows and sample w = mu + exp(ls) * eps on the
        #    fly; the full V x D sampled table is never materialized.
        # TODO(synk): generating eps in-kernel (pltpu.prng_* seeded per row id) would also remove
        # the V x D eps materialization, at the cost of bit-exact parity with a host-side sample.
        B, S = input_ids.shape
        ids_flat = input_ids.reshape(-1).astype(jnp.int32)
        emb_flat = sample_and_gather(ids_flat, self.packed, eps, self.embedding_dim,
                                     tokens_per_tile=tokens_per_tile)
        return emb_flat.reshape(B, S, self.embedding_dim), elbo


# --------------------------------------------------------------------------------------
if __name__ == "__main__":
    V, D = 100, 128         # V deliberately NOT a multiple of 8 -> exercises KL edge masking
    B, S = 2, 8             # batch, sequence

    key = jax.random.PRNGKey(0)
    k_init, k_ids, k_eps = jax.random.split(key, 3)

    module = PallasBayesEmbedding(V, D, padding_idx=None, key=k_init)
    input_ids = jax.random.randint(k_ids, (B, S), 0, V, dtype=jnp.int32)
    eps = jax.random.normal(k_eps, (V, D), jnp.float32)  # reparameterization noise

    # Pure-JAX reference.
    mu, log_sigma = module.mu, module.log_sigma
    sigma = jnp.exp(log_sigma)
    emb_ref = (mu + sigma * eps)[input_ids]
    kl_ref = jnp.sum(log_sigma + (1.0 + mu**2) / (2.0 * sigma**2) - 0.5)

    # (a) defaults: single gather tile, one vocab block per KL half.
    emb_a, elbo_a = module.forward(input_ids, eps)
    # (b) tiny tiles: multi-step gather grid (double-buffered prefetch path) and a multi-block
    #     KL grid (partial-block masking + clamped duplicate block + megacore split).
    emb_b, elbo_b = module.forward(input_ids, eps, tokens_per_tile=8,
                                   kl_block_bytes=8 * 2 * D * 4)
    emb_a, elbo_a, emb_b, elbo_b = jax.block_until_ready((emb_a, elbo_a, emb_b, elbo_b))

    for emb, elbo in ((emb_a, elbo_a), (emb_b, elbo_b)):
        assert emb.shape == (B, S, D)
        assert jnp.allclose(emb, emb_ref, atol=1e-5, rtol=1e-5)
        assert jnp.allclose(elbo, kl_ref, rtol=1e-4)

    print("KERNEL_OK")
</pallas_src>

<mosaic_0001>
module attributes {stable_mosaic.version = 11 : i64} {
  func.func @_kl_kernel(%arg0: i32, %arg1: i32, %arg2: memref<104x256xf32, #tpu.memory_space<vmem>>, %arg3: memref<1x1x128xf32, #tpu.memory_space<vmem>>) attributes {dimension_semantics = [#tpu.dimension_semantics<parallel>, #tpu.dimension_semantics<arbitrary>], iteration_bounds = array<i64: 2, 1>, scalar_prefetch = 0 : i64, scratch_operands = 0 : i64, tpu.core_type = #tpu.core_type<tc>, window_params = [{transform_indices = @transform_0, window_bounds = array<i64: 104, 256>}, {transform_indices = @transform_1, window_bounds = array<i64: 1, 1, 128>}]} {
    %c0_i32 = arith.constant 0 : i32
    %0 = arith.cmpi eq, %arg1, %c0_i32 : i32
    %1 = arith.extui %0 : i1 to i32
    %c0_i32_0 = arith.constant 0 : i32
    %2 = arith.cmpi ne, %1, %c0_i32_0 : i32
    scf.if %2 {
      %cst_13 = arith.constant 0.000000e+00 : f32
      %34 = vector.broadcast %cst_13 : f32 to vector<1x1x128xf32>
      %c0_14 = arith.constant 0 : index
      %c0_15 = arith.constant 0 : index
      %c0_16 = arith.constant 0 : index
      %35 = vector.load %arg3[%c0_14, %c0_15, %c0_16] : memref<1x1x128xf32, #tpu.memory_space<vmem>>, vector<1x1x128xf32>
      tpu.vector_store %arg3[%c0_14, %c0_15, %c0_16], %34 {strides = array<i32>} : memref<1x1x128xf32, #tpu.memory_space<vmem>>, vector<1x1x128xf32>,
    } else {
    }
    %c0 = arith.constant 0 : index
    %c0_1 = arith.constant 0 : index
    %3 = vector.load %arg2[%c0, %c0_1] : memref<104x256xf32, #tpu.memory_space<vmem>>, vector<104x256xf32>
    %4 = vector.extract_strided_slice %3 {offsets = [0, 0], sizes = [104, 128], strides = [1, 1]} : vector<104x256xf32> to vector<104x128xf32>
    %5 = vector.extract_strided_slice %3 {offsets = [0, 128], sizes = [104, 128], strides = [1, 1]} : vector<104x256xf32> to vector<104x128xf32>
    %cst = arith.constant -2.000000e+00 : f32
    %6 = vector.broadcast %cst : f32 to vector<104x128xf32>
    %7 = arith.mulf %6, %5 : vector<104x128xf32>
    %8 = math.exp %7 : vector<104x128xf32>
    %9 = arith.mulf %4, %4 : vector<104x128xf32>
    %cst_2 = arith.constant 1.000000e+00 : f32
    %10 = vector.broadcast %cst_2 : f32 to vector<104x128xf32>
    %11 = arith.addf %10, %9 : vector<104x128xf32>
    %cst_3 = arith.constant 5.000000e-01 : f32
    %12 = vector.broadcast %cst_3 : f32 to vector<104x128xf32>
    %13 = arith.mulf %12, %11 : vector<104x128xf32>
    %14 = arith.mulf %13, %8 : vector<104x128xf32>
    %15 = arith.addf %5, %14 : vector<104x128xf32>
    %cst_4 = arith.constant 5.000000e-01 : f32
    %16 = vector.broadcast %cst_4 : f32 to vector<104x128xf32>
    %17 = arith.subf %15, %16 : vector<104x128xf32>
    %c1_i32 = arith.constant 1 : i32
    %18 = arith.muli %arg0, %c1_i32 : i32
    %19 = arith.addi %18, %arg1 : i32
    %c104_i32 = arith.constant 104 : i32
    %20 = arith.muli %19, %c104_i32 : i32
    %21 = tpu.iota {dimensions = array<i32: 0>} : vector<104x128xi32>
    %22 = vector.broadcast %20 : i32 to vector<104x128xi32>
    %23 = arith.addi %22, %21 : vector<104x128xi32>
    %c100_i32 = arith.constant 100 : i32
    %24 = vector.broadcast %c100_i32 : i32 to vector<104x128xi32>
    %25 = arith.cmpi slt, %23, %24 : vector<104x128xi32>
    %cst_5 = arith.constant 0.000000e+00 : f32
    %26 = vector.broadcast %cst_5 : f32 to vector<104x128xf32>
    %27 = arith.select %25, %17, %26 : vector<104x128xi1>, vector<104x128xf32>
    %c0_6 = arith.constant 0 : index
    %c0_7 = arith.constant 0 : index
    %c0_8 = arith.constant 0 : index
    %28 = vector.load %arg3[%c0_6, %c0_7, %c0_8] : memref<1x1x128xf32, #tpu.memory_space<vmem>>, vector<1x1x128xf32>
    %cst_9 = arith.constant dense<0.000000e+00> : vector<128xf32>
    %29 = vector.multi_reduction <add>, %27, %cst_9 [0] : vector<104x128xf32> to vector<128xf32>
    %30 = vector.shape_cast %29 : vector<128xf32> to vector<1x128xf32>
    %31 = vector.shape_cast %30 : vector<1x128xf32> to vector<1x1x128xf32>
    %32 = arith.addf %28, %31 : vector<1x1x128xf32>
    %c0_10 = arith.constant 0 : index
    %c0_11 = arith.constant 0 : index
    %c0_12 = arith.constant 0 : index
    %33 = vector.load %arg3[%c0_10, %c0_11, %c0_12] : memref<1x1x128xf32, #tpu.memory_space<vmem>>, vector<1x1x128xf32>
    tpu.vector_store %arg3[%c0_10, %c0_11, %c0_12], %32 {strides = array<i32>} : memref<1x1x128xf32, #tpu.memory_space<vmem>>, vector<1x1x128xf32>,
    return
  }
  func.func @transform_0(%arg0: i32, %arg1: i32) -> (i32, i32) {
    %c1_i32 = arith.constant 1 : i32
    %0 = arith.muli %arg0, %c1_i32 : i32
    %1 = arith.addi %0, %arg1 : i32
    %c0_i32 = arith.constant 0 : i32
    %2 = arith.minsi %1, %c0_i32 : i32
    %c0_i32_0 = arith.constant 0 : i32
    %c0_i32_1 = arith.constant 0 : i32
    return %2, %c0_i32_0 : i32, i32
  }
  func.func @transform_1(%arg0: i32, %arg1: i32) -> (i32, i32, i32) {
    %c0_i32 = arith.constant 0 : i32
    %c0_i32_0 = arith.constant 0 : i32
    %c0_i32_1 = arith.constant 0 : i32
    return %arg0, %c0_i32, %c0_i32_0 : i32, i32, i32
  }
}

</mosaic_0001>

<bundles_post_ra>
// kernel: tpu_custom_call.1
= control target key start
LH: loop header
LB: loop body
LE: loop exit
PB: predicated region body
PF: predicated region fallthrough
CT: control target
= control target key end

     0   :  { %6 = vsyncpa [#allocation3], 0  ;;  %s1077_s0 = inlined_call_operand.hbm [shape: f32[100,256], index: 0, kind: input, shape index: {}]   ;;  %s1078_s1 = inlined_call_operand.hbm [shape: f32[2,1,128], index: 1, kind: output, shape index: {}]  }
   0x1   :  { %8 = vsyncpa [#allocation3 + $0x1], 0 }
   0x2   :  { %9 = vsyncpa [#allocation4], 0 }
   0x3   :  { %11 = vsyncpa [#allocation4 + $0x1], 0  ;;  %s765_s6 = smov 0   ;;  %s767_s7 = smov 0  }
   0x4   :  { %s769_s8 = smov 0   ;;  %s771_s9 = smov 0  }
   0x5   :  { %s773_s10 = smov 0   ;;  %s775_s11 = smov 0  }
   0x6   :  { %s777_s12 = smov 0   ;;  %s779_s13 = smov 0  }
   0x7 LB: > { %s472_s14 = sadd.s32 4294967295, %s748_s13   ;;  %s473_s15 = sadd.s32 4294967294, %s748_s13   ;;  %s748_s13 = sphi %s779_s13, %s17_s13   ;;  %s744_s12 = sphi %s777_s12, %s1097_s12   ;;  %s740_s11 = sphi %s775_s11, %s1096_s11   ;;  %s736_s10 = sphi %s773_s10, %s1067_s10   ;;  %s732_s9 = sphi %s771_s9, %s1095_s9   ;;  %s728_s8 = sphi %s769_s8, %s1094_s8   ;;  %s724_s7 = sphi %s767_s7, %s1093_s7   ;;  %s720_s6 = sphi %s765_s6, %s1092_s6  }
   0x8   : > { %s29_s16 = sadd.s32 1, %s744_s12  ;;  %p717_p1 = scmp.ne.s32.totalorder %s736_s10, 0 }
   0x9   : > { %p31_p0 = scmp.ge.s32.totalorder %s29_s16, 2  ;;  %p50_p2 = scmp.eq.s32.totalorder %s748_s13, 0 }
   0xa   : > { %p55_p3 = scmp.ne.s32.totalorder %s736_s10, %s732_s9  ;;  %p56_p5 = scmp.eq.s32.totalorder %s472_s14, 0 }
   0xb   : > { %s1099_s16 = smov (%p31_p0, %s29_s16), 0  ;;  %p811_p4 = por %p717_p1, %p50_p2 }
   0xc   : > { %p815_p6 = por %p56_p5, %p55_p3  ;;  %s65_s19 = ssub.s32 %s744_s12, %s1099_s16 }
   0xd   : > { %p66_p7 = scmp.eq.s32.totalorder %s65_s19, 0  ;;  %s68_s20 = sadd.s32 1, %s728_s8 }
   0xe   : > { %s1083_s18 = scalar_select %p815_p6, 1, 0 }
   0xf   : > { %s823_s21 = scalar_select %p66_p7, %s728_s8, %s68_s20  }
  0x10   : > { %p78_p8 = scmp.ne.s32.totalorder %s728_s8, %s724_s7  ;;  %p79_p9 = scmp.eq.s32.totalorder %s472_s14, 1 }
  0x11   : > { %p84_p10 = scmp.ne.s32.totalorder %s724_s7, %s720_s6  ;;  %p85_p11 = scmp.eq.s32.totalorder %s473_s15, 1 }
  0x12   : > { %p829_p12 = por %p79_p9, %p78_p8  ;;  %p512_p1 = scmp.lt.s32.totalorder %s748_s13, 2 }
  0x13   : > { %p834_p0 = por %p85_p11, %p84_p10  ;;  %s750_s25 = smov [#allocation2]  }
  0x14   : > { %s1084_s22 = scalar_select %p829_p12, 1, 0 }
  0x15   : > { %s1085_s23 = scalar_select %p834_p0, 1, 0 }
  0x16   : > { %p841_p2 = pnand %p512_p1, %p811_p4  ;;  %s120_s26 = sshll.u32 %s750_s25, 4  ;;  %s121_s26 = int_to_ptr.vmem [resolvable:$true] %s120_s26 }
  0x17   : > { %s615_s29 = scalar_lea.hbm %s1077_s0, 3328 }
  0x18   : > { %s1086_s24 = scalar_select %p841_p2, 1, 0 }
  0x19   : > { %p616_p3 = scmp.ne.s32.totalorder %s1077_s0, %s615_s29  ;;  %p617_p5 = pneg %p841_p2 }
  0x1a   : > { %p622_p4 = scmp.lt.u32.totalorder %s615_s29, %s615_s29  ;;  %p624_p9 = scmp.lt.u32.totalorder %s615_s29, %s1077_s0 }
  0x1b   : > { %p618_p7 = pnand %p617_p5, %p616_p3 }
  0x1c   : > { %p625_p10 = por %p624_p9, %p622_p4 }
  0x1d   : > { %p619_p8 = pneg %p618_p7 }
  0x1f   : > { %p626_p11 = pnand %p625_p10, %p619_p8 }
  0x21   : > { %629 = shalt.err (!%p626_p11)
}
  0x22   : > { %s630_s5 = scalar_lea.vmem %s121_s26, 3328  ;;  %s637_s9 = scalar_lea.vmem %s121_s26, 6656 }
  0x23   : > { %p631_p1 = scmp.ne.s32.totalorder %s121_s26, %s630_s5  ;;  %p638_p12 = scmp.lt.s32.totalorder %s121_s26, %s121_s26 }
  0x24   : > { %p639_p6 = scmp.lt.s32.totalorder %s637_s9, %s630_s5 }
  0x25   : > { %p633_p13 = pnand %p631_p1, %p617_p5 }
  0x26   : > { %p640_p2 = por %p639_p6, %p638_p12 }
  0x27   : > { %p634_p0 = pneg %p633_p13 }
  0x29   : > { %p641_p3 = pnand %p640_p2, %p634_p0 }
  0x2b   : > { %644 = shalt.err (!%p641_p3)
}
  0x2c   : > { %s751_s14 = smov 256   ;;  %s752_s15 = smov 16  }
  0x2d   : > { %p1087_p7 = scmp.ne.s32.totalorder %s1086_s24, 0  ;;  %p478_p8 = scmp.ge.s32.totalorder %s748_s13, 1 }
  0x2e   : > { %p128_p4 = scmp.lt.s32.totalorder %s748_s13, 3 }
  0x2f   : > { %507 = dma.hbm_to_vmem [thread:$0]  (!%p1087_p7), %s1077_s0, 3328, %s121_s26, [#allocation3], %s751_s14, %s751_s14, %s752_s15  }
  0x30   : > { %p129_p5 = pnand %p478_p8, %p128_p4 }
  0x31   : > { %s134_s20 = sand.u32 (!%p129_p5), 1, %s736_s10   ;;  %p1088_p6 = scmp.ne.s32.totalorder (!%p129_p5), %s1083_s18, 0 }
  0x32   : > { %132 = sbr.rel (%p129_p5) target bundleno = 142 (0x8e), region = 24  ;;  %s135_s27 = scalar_lea.sflag (!%p129_p5), [#allocation3], %s134_s20 }
  0x33   : > { %s499_s25 = smul.u32 (!%p129_p5), 208, %s134_s20 }
  0x35   : > { %s864_s28 = scalar_lea.vmem (!%p129_p5), [#allocation2], %s499_s25 }
  0x39   : > { %710 = dma.done.wait (%p1088_p6), %s135_s27, 3328  }
  0x3a   : > { %712 = vsyncadd (%p1088_p6), %s135_s27, 4294963968  ;;  %s154_s24 = sand.u32 1, %s724_s7   ;;  %v753_v0 = vmov 0.0   ;;  %v877_v1 = vld [vmem:[%s864_s28 + $0x8] sm:$0xff]  ;;  %v880_v2 = vld [vmem:[%s864_s28 + $0x18] sm:$0xff]  ;;  %v310_v7 = vlaneseq  ;;  %s309_s18 = smul.u32 104, %s740_s11 }
  0x3b   : > { %s873_s26 = scalar_lea.vmem [#allocation5], %s154_s24  ;;  %v883_v3 = vld [vmem:[%s864_s28 + $0x28] sm:$0xff]  ;;  %v191_v4 = vmul.f32 -2.0, %v877_v1  ;;  %v192_v5 = vmul.f32 -2.0, %v880_v2  ;;  %v888_v6 = vld [vmem:[%s864_s28 + $0x38] sm:$0xff]  ;;  %v165_v15 = vld [vmem:[%s864_s28] sm:$0xff] }
  0x3c   : > { %164 = vst [vmem:[%s873_s26] sm:$0x1] %v753_v0  ;;  %v193_v8 = vmul.f32 -2.0, %v883_v3  ;;  %v892_v9 = vld [vmem:[%s864_s28 + $0x48] sm:$0xff]  ;;  %v194_v11 = vmul.f32 -2.0, %v888_v6  ;;  %v896_v13 = vld [vmem:[%s864_s28 + $0x58] sm:$0xff]  ;;  %v899_v14 = vshrl.u32 %v310_v7, 7  ;;  %v230_v24 = vmul.f32 %v165_v15, %v165_v15 }
  0x3d   : > { %v204_v10 = vmul.f32 1.442695, %v191_v4  ;;  %v206_v12 = vmul.f32 1.442695, %v192_v5  ;;  %v167_v16 = vld [vmem:[%s864_s28 + $0x10] sm:$0xff]  ;;  %v195_v17 = vmul.f32 -2.0, %v892_v9  ;;  %v913_v27 = vstv %s309_s18 }
  0x3e   : > { %v208_v18 = vmul.f32 1.442695, %v193_v8  ;;  %v905_v19 = vld [vmem:[%s864_s28 + $0x68] sm:$0xff]  ;;  %v169_v20 = vld [vmem:[%s864_s28 + $0x20] sm:$0xff]  ;;  %v909_v21 = vld [vmem:[%s864_s28 + $0x78] sm:$0xff]  ;;  %v196_v22 = vmul.f32 -2.0, %v896_v13  ;;  %v231_v25 = vmul.f32 %v167_v16, %v167_v16  ;;  %v952_v57 = vadd.s32 %v913_v27, %v899_v14 }
  0x3f   : > { %589 = vpow2.f32 %v204_v10  ;;  %v210_v23 = vmul.f32 1.442695, %v194_v11  ;;  %v312_v26 = vadd.s32 8, %v899_v14  ;;  %v171_v28 = vld [vmem:[%s864_s28 + $0x30] sm:$0xff]  ;;  %v197_v29 = vmul.f32 -2.0, %v905_v19  ;;  %v919_v32 = vld [vmem:[%s864_s28 + $0x88] sm:$0xff] }
  0x40   : > { %591 = vpow2.f32 %v206_v12  ;;  %v212_v30 = vmul.f32 1.442695, %v195_v17  ;;  %v313_v31 = vadd.s32 16, %v899_v14  ;;  %v198_v33 = vmul.f32 -2.0, %v909_v21  ;;  %v173_v37 = vld [vmem:[%s864_s28 + $0x40] sm:$0xff]  ;;  %v932_v41 = vld [vmem:[%s864_s28 + $0x98] sm:$0xff] }
  0x41   : > { %593 = vpow2.f32 %v208_v18  ;;  %v232_v34 = vmul.f32 %v169_v20, %v169_v20  ;;  %v314_v35 = vadd.s32 24, %v899_v14  ;;  %v315_v36 = vadd.s32 32, %v899_v14  ;;  %v175_v46 = vld [vmem:[%s864_s28 + $0x50] sm:$0xff]  ;;  %v943_v50 = vld [vmem:[%s864_s28 + $0xa8] sm:$0xff]  ;;  %v177_v55 = vld [vmem:[%s864_s28 + $0x60] sm:$0xff]  ;;  %s492_s29 = sshll.u32 %s740_s11, 4 }
  0x42   : > { %595 = vpow2.f32 %v210_v23  ;;  %v214_v38 = vmul.f32 1.442695, %v196_v22  ;;  %v926_v39 = vadd.s32 40, %v899_v14  ;;  %v929_v40 = vadd.s32 48, %v899_v14  ;;  %v179_v60 = vld [vmem:[%s864_s28 + $0x70] sm:$0xff]  ;;  %v959_v61 = vld [vmem:[%s864_s28 + $0xb8] sm:$0xff]  ;;  %s1021_s4 = scalar_lea.hbm %s1078_s1, %s492_s29 }
  0x43   : > { %v233_v42 = vmul.f32 %v171_v28, %v171_v28  ;;  %v243_v43 = vadd.f32 1.0, %v230_v24  ;;  %v244_v44 = vadd.f32 1.0, %v231_v25  ;;  %v935_v45 = vadd.s32 56, %v899_v14  ;;  %v966_v11 = vld [vmem:[%s864_s28 + $0xc8] sm:$0xff]  ;;  %v181_v18 = vld [vmem:[%s864_s28 + $0x80] sm:$0xff]  ;;  %v183_v25 = vld [vmem:[%s864_s28 + $0x90] sm:$0xff] }
  0x44   : > { %v199_v47 = vmul.f32 -2.0, %v919_v32  ;;  %597 = vpow2.f32 %v212_v30  ;;  %v216_v48 = vmul.f32 1.442695, %v197_v29  ;;  %v940_v49 = vadd.s32 64, %v899_v14  ;;  %s398_s30 = sshll.u32 %s873_s26, 4  ;;  %s386_s5 = scalar_lea.sflag [#allocation4], %s154_s24  ;;  %s1023_s30 = int_to_ptr.vmem [resolvable:$true] %s398_s30 }
  0x45   : > { %v218_v51 = vmul.f32 1.442695, %v198_v33  ;;  %v234_v52 = vmul.f32 %v173_v37, %v173_v37  ;;  %v245_v53 = vadd.f32 1.0, %v232_v34  ;;  %v946_v54 = vadd.s32 72, %v899_v14  ;;  %s645_s9 = scalar_lea.vmem %s1023_s30, 16  ;;  %p1089_p13 = scmp.ne.s32.totalorder %s1084_s22, 0 }
  0x46   : > { %v200_v56 = vmul.f32 -2.0, %v932_v41  ;;  %599 = vpow2.f32 %v214_v38  ;;  %v955_v58 = vadd.s32 %v913_v27, %v312_v26  ;;  %v235_v62 = vmul.f32 %v175_v46, %v175_v46  ;;  %v185_v38 = vld [vmem:[%s864_s28 + $0xa0] sm:$0xff]  ;;  %p646_p12 = scmp.ne.s32.totalorder %s1023_s30, %s645_s9  ;;  %s754_s11 = smov [#allocation5]  }
  0x47   : > { %v246_v63 = vadd.f32 1.0, %v233_v42  ;;  %v256_v0 = vmul.f32 0.5, %v243_v43  ;;  %v257_v4 = vmul.f32 0.5, %v244_v44  ;;  %v201_v7 = vmul.f32 -2.0, %v943_v50  ;;  %v187_v42 = vld [vmem:[%s864_s28 + $0xb0] sm:$0xff]  ;;  %s649_s14 = sshll.u32 %s754_s11, 4  ;;  %s650_s14 = int_to_ptr.vmem [resolvable:$false] %s649_s14 }
  0x48   : > { %601 = vpow2.f32 %v216_v48  ;;  %v220_v8 = vmul.f32 1.442695, %v199_v47  ;;  %v963_v10 = vadd.s32 %v913_v27, %v313_v31  ;;  %v236_v12 = vmul.f32 %v177_v55, %v177_v55  ;;  %p647_p0 = pnand %p646_p12, %p1089_p13  ;;  %s651_s15 = scalar_lea.vmem %s650_s14, 32 }
  0x49   : > { %v590_v59 = vpop.eup %589  ;;  %603 = vpow2.f32 %v218_v51  ;;  %v247_v15 = vadd.f32 1.0, %v234_v52  ;;  %v258_v16 = vmul.f32 0.5, %v245_v53  ;;  %v202_v20 = vmul.f32 -2.0, %v959_v61  ;;  %v189_v53 = vld [vmem:[%s864_s28 + $0xc0] sm:$0xff]  ;;  %p652_p9 = scmp.lt.s32.totalorder %s1023_s30, %s650_s14  ;;  %p653_p10 = scmp.lt.s32.totalorder %s651_s15, %s645_s9 }
  0x4a   : > { %v592_v5 = vpop.eup %591  ;;  %v222_v22 = vmul.f32 1.442695, %v200_v56  ;;  %v237_v23 = vmul.f32 %v179_v60, %v179_v60  ;;  %v971_v24 = vadd.s32 %v913_v27, %v314_v35  ;;  %v248_v26 = vadd.f32 1.0, %v235_v62  ;;  %p648_p2 = pneg %p647_p0 }
  0x4b   : > { %v594_v17 = vpop.eup %593  ;;  %v259_v28 = vmul.f32 0.5, %v246_v63  ;;  %v269_v29 = vmul.f32 %v590_v59, %v256_v0  ;;  %v270_v30 = vmul.f32 %v592_v5, %v257_v4  ;;  %v203_v33 = vmul.f32 -2.0, %v966_v11  ;;  %p654_p11 = por %p653_p10, %p652_p9 }
  0x4c   : > { %v596_v31 = vpop.eup %595  ;;  %605 = vpow2.f32 %v220_v8  ;;  %v224_v34 = vmul.f32 1.442695, %v201_v7  ;;  %v976_v37 = vadd.s32 %v913_v27, %v315_v36  ;;  %v238_v43 = vmul.f32 %v181_v18, %v181_v18 }
  0x4d   : > { %v249_v44 = vadd.f32 1.0, %v236_v12  ;;  %v260_v35 = vmul.f32 0.5, %v247_v15  ;;  %v271_v46 = vmul.f32 %v594_v17, %v258_v16  ;;  %607 = vpow2.f32 %v222_v22  ;;  %p655_p1 = pnand %p654_p11, %p648_p2 }
  0x4e   : > { %v598_v47 = vpop.eup %597  ;;  %v226_v48 = vmul.f32 1.442695, %v202_v20  ;;  %v239_v51 = vmul.f32 %v183_v25, %v183_v25  ;;  %v250_v52 = vadd.f32 1.0, %v237_v23  ;;  %v261_v55 = vmul.f32 0.5, %v248_v26 }
  0x4f   : > { %v272_v56 = vmul.f32 %v596_v31, %v259_v28  ;;  %v282_v59 = vadd.f32 %v269_v29, %v877_v1  ;;  %v283_v60 = vadd.f32 %v270_v30, %v880_v2  ;;  %609 = vpow2.f32 %v224_v34 }
  0x50   : > { %v600_v36 = vpop.eup %599  ;;  %v228_v62 = vmul.f32 1.442695, %v203_v33  ;;  %v240_v63 = vmul.f32 %v185_v38, %v185_v38  ;;  %v241_v0 = vmul.f32 %v187_v42, %v187_v42  ;;  %v251_v4 = vadd.f32 1.0, %v238_v43 }
  0x51   : > { %v262_v5 = vmul.f32 0.5, %v249_v44  ;;  %v273_v7 = vmul.f32 %v598_v47, %v260_v35  ;;  %v284_v8 = vadd.f32 %v271_v46, %v883_v3  ;;  %611 = vpow2.f32 %v226_v48 }
  0x52   : > { %v602_v12 = vpop.eup %601  ;;  %v242_v15 = vmul.f32 %v189_v53, %v189_v53  ;;  %v252_v16 = vadd.f32 1.0, %v239_v51  ;;  %v263_v17 = vmul.f32 0.5, %v250_v52  ;;  %v274_v20 = vmul.f32 %v600_v36, %v261_v55 }
  0x53   : > { %v604_v18 = vpop.eup %603  ;;  %v285_v1 = vadd.f32 %v272_v56, %v888_v6  ;;  %v479_v2 = vadd.f32 -0.5, %v282_v59  ;;  %v480_v22 = vadd.f32 -0.5, %v283_v60  ;;  %613 = vpow2.f32 %v228_v62 }
  0x54   : > { %v253_v23 = vadd.f32 1.0, %v240_v63  ;;  %vm338_vm0 = vcmp.lt.s32.totalorder %v952_v57, 100  ;;  %vm339_vm1 = vcmp.lt.s32.totalorder %v955_v58, 100  ;;  %v264_v25 = vmul.f32 0.5, %v251_v4 }
  0x55   : > { %v275_v26 = vmul.f32 %v602_v12, %v262_v5  ;;  %v286_v3 = vadd.f32 %v273_v7, %v892_v9  ;;  %v481_v28 = vadd.f32 -0.5, %v284_v8  ;;  %v254_v30 = vadd.f32 1.0, %v241_v0 }
  0x56   : > { %v606_v29 = vpop.eup %605  ;;  %v265_v31 = vmul.f32 0.5, %v252_v16  ;;  %v276_v33 = vmul.f32 %v604_v18, %v263_v17  ;;  %vm340_vm2 = vcmp.lt.s32.totalorder %v963_v10, 100  ;;  %v287_v6 = vadd.f32 %v274_v20, %v896_v13 }
  0x57   : > { %v482_v34 = vadd.f32 -0.5, %v285_v1  ;;  %v351_v38 = vsel %vm338_vm0, %v479_v2, 0.0  ;;  %v352_v42 = vsel %vm339_vm1, %v480_v22, 0.0  ;;  %v608_v43 = vpop.eup %607  ;;  %v255_v57 = vadd.f32 1.0, %v242_v15 }
  0x58   : > { %v266_v44 = vmul.f32 0.5, %v253_v23  ;;  %v330_v58 = vadd.s32 %v913_v27, %v926_v39  ;;  %vm341_vm3 = vcmp.lt.s32.totalorder %v971_v24, 100  ;;  %v277_v9 = vmul.f32 %v606_v29, %v264_v25 }
  0x59   : > { %v288_v35 = vadd.f32 %v275_v26, %v905_v19  ;;  %v483_v46 = vadd.f32 -0.5, %v286_v3  ;;  %v353_v47 = vsel %vm340_vm2, %v481_v28, 0.0  ;;  %v610_v48 = vpop.eup %609  ;;  %v267_v10 = vmul.f32 0.5, %v254_v30 }
  0x5a   : > { %v331_v13 = vadd.s32 %v913_v27, %v929_v40  ;;  %vm342_vm4 = vcmp.lt.s32.totalorder %v976_v37, 100  ;;  %v365_v51 = vadd.f32 %v352_v42, %v351_v38  ;;  %v278_v52 = vmul.f32 %v608_v43, %v265_v31 }
  0x5b   : > { %v289_v53 = vadd.f32 %v276_v33, %v909_v21  ;;  %v484_v55 = vadd.f32 -0.5, %v287_v6  ;;  %v354_v39 = vsel %vm341_vm3, %v482_v34, 0.0  ;;  %v612_v56 = vpop.eup %611  ;;  %v268_v24 = vmul.f32 0.5, %v255_v57 }
  0x5c   : > { %v332_v19 = vadd.s32 %v913_v27, %v935_v45  ;;  %vm343_vm5 = vcmp.lt.s32.totalorder %v330_v58, 100  ;;  %v366_v59 = vadd.f32 %v365_v51, %v353_v47  ;;  %v279_v60 = vmul.f32 %v610_v48, %v266_v44 }
  0x5d   : > { %v290_v36 = vadd.f32 %v277_v9, %v919_v32  ;;  %v485_v62 = vadd.f32 -0.5, %v288_v35  ;;  %v355_v40 = vsel %vm342_vm4, %v483_v46, 0.0  ;;  %v614_v63 = vpop.eup %613  ;;  %v321_v37 = vadd.s32 80, %v899_v14  ;;  %v364_v9 = vld [vmem:[%s873_s26] sm:$0x1] }
  0x5e   : > { %v333_v21 = vadd.s32 %v913_v27, %v940_v49  ;;  %vm344_vm6 = vcmp.lt.s32.totalorder %v331_v13, 100  ;;  %v367_v0 = vadd.f32 %v366_v59, %v354_v39  ;;  %v280_v4 = vmul.f32 %v612_v56, %v267_v10 }
  0x5f   : > { %v291_v5 = vadd.f32 %v278_v52, %v932_v41  ;;  %v486_v7 = vadd.f32 -0.5, %v289_v53  ;;  %v356_v45 = vsel %vm343_vm5, %v484_v55, 0.0  ;;  %v322_v8 = vadd.s32 88, %v899_v14 }
  0x60   : > { %v334_v32 = vadd.s32 %v913_v27, %v946_v54  ;;  %vm345_vm7 = vcmp.lt.s32.totalorder %v332_v19, 100  ;;  %v368_v12 = vadd.f32 %v367_v0, %v355_v40  ;;  %v281_v15 = vmul.f32 %v614_v63, %v268_v24 }
  0x61   : > { %v292_v16 = vadd.f32 %v279_v60, %v943_v50  ;;  %v487_v17 = vadd.f32 -0.5, %v290_v36  ;;  %v357_v18 = vsel %vm344_vm6, %v485_v62, 0.0  ;;  %v323_v49 = vadd.s32 96, %v899_v14 }
  0x62   : > { %v335_v20 = vadd.s32 %v913_v27, %v321_v37  ;;  %vm346_vm8 = vcmp.lt.s32.totalorder %v333_v21, 100  ;;  %v369_v41 = vadd.f32 %v368_v12, %v356_v45  ;;  %v293_v1 = vadd.f32 %v280_v4, %v959_v61 }
  0x63   : > { %v488_v2 = vadd.f32 -0.5, %v291_v5  ;;  %v358_v22 = vsel %vm345_vm7, %v486_v7, 0.0  ;;  %v336_v23 = vadd.s32 %v913_v27, %v322_v8  ;;  %vm347_vm9 = vcmp.lt.s32.totalorder %v334_v32, 100 }
  0x64   : > { %v370_v54 = vadd.f32 %v369_v41, %v357_v18  ;;  %v294_v25 = vadd.f32 %v281_v15, %v966_v11  ;;  %v489_v26 = vadd.f32 -0.5, %v292_v16  ;;  %v359_v50 = vsel %vm346_vm8, %v487_v17, 0.0 }
  0x65   : > { %v337_v3 = vadd.s32 %v913_v27, %v323_v49  ;;  %vm348_vm10 = vcmp.lt.s32.totalorder %v335_v20, 100  ;;  %v490_v28 = vadd.f32 -0.5, %v293_v1  ;;  %v360_v29 = vsel %vm347_vm9, %v488_v2, 0.0 }
  0x66   : > { %v371_v14 = vadd.f32 %v370_v54, %v358_v22  ;;  %vm349_vm11 = vcmp.lt.s32.totalorder %v336_v23, 100  ;;  %v491_v61 = vadd.f32 -0.5, %v294_v25  ;;  %v361_v31 = vsel %vm348_vm10, %v489_v26, 0.0 }
  0x67   : > { %vm350_vm12 = vcmp.lt.s32.totalorder %v337_v3, 100  ;;  %v362_v6 = vsel %vm349_vm11, %v490_v28, 0.0 }
  0x68   : > { %v372_v30 = vadd.f32 %v371_v14, %v359_v50  ;;  %v363_v11 = vsel %vm350_vm12, %v491_v61, 0.0 }
  0x6a   : > { %v373_v33 = vadd.f32 %v372_v30, %v360_v29 }
  0x6c   : > { %v374_v34 = vadd.f32 %v373_v33, %v361_v31 }
  0x6e   : > { %v375_v38 = vadd.f32 %v374_v34, %v362_v6 }
  0x70   : > { %v376_v27 = vadd.f32 %v375_v38, %v363_v11 }
  0x72   : > { %v377_v42 = vrot.slane %v376_v27, 4 }
  0x74   : > { %v378_v43 = vadd.f32 %v377_v42, %v376_v27 }
  0x76   : > { %v379_v57 = vrot.slane %v378_v43, 2 }
  0x78   : > { %v380_v44 = vadd.f32 %v379_v57, %v378_v43 }
  0x7a   : > { %v381_v58 = vrot.slane %v380_v44, 1 }
  0x7c   : > { %v382_v35 = vadd.f32 %v381_v58, %v380_v44 }
  0x7e   : > { %v383_v46 = vadd.f32 %v382_v35, %v364_v9 }
  0x80   : > { %384 = vst [vmem:[%s873_s26] sm:$0x1] %v383_v46 }
  0x81   : > { %658 = shalt.err (!%p655_p1)
}
  0x82   : > { %s659_s17 = scalar_lea.hbm %s1021_s4, 16  ;;  %s663_s25 = scalar_lea.hbm %s1078_s1, 32 }
  0x83   : > { %p660_p3 = scmp.ne.s32.totalorder %s1021_s4, %s659_s17  ;;  %p664_p4 = scmp.lt.u32.totalorder %s1021_s4, %s1078_s1 }
  0x84   : > { %p665_p5 = scmp.lt.u32.totalorder %s663_s25, %s659_s17  ;;  %p667_p12 = scmp.lt.u32.totalorder %s659_s17, %s1021_s4 }
  0x85   : > { %p661_p7 = pnand %p660_p3, %p1089_p13 }
  0x86   : > { %p666_p6 = por %p665_p5, %p664_p4 }
  0x87   : > { %p662_p8 = pneg %p661_p7 }
  0x88   : > { %p668_p0 = por %p667_p12, %p666_p6 }
  0x8a   : > { %p669_p2 = pnand %p668_p0, %p662_p8 }
  0x8c   : > { %672 = shalt.err (!%p669_p2)
}
  0x8d   : > { %502 = dma.vmem_to_hbm [thread:$0]  (%p1089_p13), %s1023_s30, 16, %s1021_s4, %s386_s5  }
  0x8e PF: > { %s410_s24 = sand.u32 1, %s720_s6   ;;  %p1090_p9 = scmp.ne.s32.totalorder %s1085_s23, 0 }
  0x8f   : > { %p1091_p10 = scmp.ge.s32.totalorder %s748_s13, 2  ;;  %s411_s26 = scalar_lea.sflag [#allocation4], %s410_s24 }
  0x91   : > { %p509_p11 = pnand %p1091_p10, %p1090_p9 }
  0x93   : > { %714 = dma.done.wait (!%p509_p11), %s411_s26, 16  }
  0x94   : > { %716 = vsyncadd (!%p509_p11), %s411_s26, 4294967280  ;;  %s17_s13 = sadd.s32 1, %s748_s13   ;;  %s1092_s6 = smov %s724_s7 }
  0x95   : > { %p14_p1 = scmp.ge.s32.totalorder %s17_s13, 4   ;;  %s1093_s7 = smov %s728_s8 }
  0x96   : > { %s1094_s8 = smov %s823_s21  ;;  %s1095_s9 = smov %s736_s10 }
  0x97   : > { %s1067_s10 = smov 0   ;;  %s1096_s11 = smov %s744_s12 }
  0x98   : > { %s1097_s12 = smov %s1099_s16  ;;  %16 = sbr.rel (!%p14_p1) target bundleno = 7 (0x7), region = 73 }
  0x9f   :  { %415 = vsyncpa [#allocation3], 1 }
  0xa0   :  { %417 = vsyncpa [#allocation3 + $0x1], 1 }
  0xa1   :  { %418 = vsyncpa [#allocation4], 1 }
  0xa2   :  { %420 = vsyncpa [#allocation4 + $0x1], 1 }

</bundles_post_ra>
